<compile_context>
chip_gen: v6e
topology: v6e:2x2x1
jax: 0.10.0
libtpu: 0.0.40
codegen_flags: <defaults>
</compile_context>

<pallas_src>
import jax
import jax.numpy as jnp
from jax.experimental import pallas as pl
from jax.experimental.pallas import tpu as pltpu

# ----------------- config (mirrors GNN_encoder.__init__ defaults) ------------
NUM_LAYER = 2          # num_layer
VOCAB = 64             # vocab_size
D = 32                 # sub_token_emb_dim == node_attr_dim == node_rep_dim ('bag')
HID = 2 * D            # GIN MLP hidden width
NUM_EDGE_TYPE = 8      # stands in for len(json.load('tokens/edge_type.json'))
NUM_CLASS = 4          # num_class
OUT_PAD = 128          # lane-dense padded classifier width (sliced in wrapper)
BN_EPS = 1e-5
# drop_ratio = 0 -> F.dropout is a no-op, omitted on purpose.

# parameter-slab row layout (rows x 128 lanes, f32):
#   rows 4*l .. 4*l+3 : [b1 | b2 | gamma | beta] for GIN layer l
#   row  ROW_BPRED    : padded classifier bias (OUT_PAD lanes)
#   rows ROW_POOL ..  : per-graph pooling scale [ones(D) | inv_cnt(D)] (2D lanes)
ROW_BPRED = NUM_LAYER * 4
ROW_POOL = ROW_BPRED + 1


# ----------------------------- fused Pallas kernel ----------------------------
def fused_gnn_encoder_kernel(counts_ref, table_ref, adj_ref, eemb_scat_ref,
                             w1_ref, w2_ref, slab_ref, batch_oh_ref,
                             w_pred_ref, out_ref):
    B = batch_oh_ref.shape[0]

    # --- WordBag / EmbeddingBag(sum): bag-of-subtokens == counts @ table (MXU)
    x_emb = jnp.dot(counts_ref[...], table_ref[...],
                    preferred_element_type=jnp.float32)          # (N, D) f32
    x_emb_bf = x_emb.astype(jnp.bfloat16)                        # cast once, reused

    adj = adj_ref[...]              # (N, N) bf16: A[i, j] = #edges j -> i
    eemb_scat = eemb_scat_ref[...]  # (N, D) f32:  sum_{dst(e)=i} edge_emb_e

    # --- num_layer x (GINConv -> BatchNorm1d -> [ReLU]), h kept in vregs/VMEM
    h = x_emb
    h_bf = x_emb_bf
    for layer in range(NUM_LAYER):                  # static unroll, NUM_LAYER=2
        base = 4 * layer
        b1 = slab_ref[base + 0:base + 1, :HID]      # (1, HID) f32
        b2 = slab_ref[base + 1:base + 2, :D]        # (1, D)   f32
        gamma = slab_ref[base + 2:base + 3, :D]
        beta = slab_ref[base + 3:base + 4, :D]

        # GINConv aggregation (exact linear-operator rewrite):
        #   aggr_i = h_i + sum_{e: dst(e)=i} (h_{src(e)} + edge_emb_e)
        #          = h_i + (A @ h)_i + eemb_scat_i
        aggr = h + jnp.dot(adj, h_bf, preferred_element_type=jnp.float32) \
             + eemb_scat

        # GIN 2-layer MLP (bf16 MXU, f32 accumulate)
        z = jnp.dot(aggr.astype(jnp.bfloat16), w1_ref[layer],
                    preferred_element_type=jnp.float32) + b1
        z = jnp.maximum(z, 0.0)
        z = jnp.dot(z.astype(jnp.bfloat16), w2_ref[layer],
                    preferred_element_type=jnp.float32) + b2

        # BatchNorm1d (training-mode batch stats, like PyTorch BN forward).
        # Single-pass variance E[z^2] - E[z]^2, clamped >= 0 (cancellation at
        # small N); BN math kept in f32 for v5e (no bf16 VPU/EUP).
        mean = jnp.mean(z, axis=0, keepdims=True)
        var = jnp.maximum(
            jnp.mean(z * z, axis=0, keepdims=True) - mean * mean, 0.0)
        out = gamma * ((z - mean) * jax.lax.rsqrt(var + BN_EPS)) + beta
        if layer != NUM_LAYER - 1:                  # ReLU on all but last layer
            out = jnp.maximum(out, 0.0)
        h = out
        h_bf = out.astype(jnp.bfloat16)
    # JK == 'last' -> node_representation = h

    # --- task='javasmall', repWay='append' head, fused pooling:
    #   [ global_add_pool(x_emb) | global_mean_pool(h) ]  in ONE (B,N)@(N,2D)
    #   matmul; the per-row scale [ones | inv_cnt] comes from the slab.
    xh = jnp.concatenate([x_emb_bf, h_bf], axis=1)               # (N, 2D) bf16
    pool_scale = slab_ref[ROW_POOL:ROW_POOL + B, :2 * D]         # (B, 2D) f32
    rep = jnp.dot(batch_oh_ref[...], xh,
                  preferred_element_type=jnp.float32) * pool_scale
    b_pred = slab_ref[ROW_BPRED:ROW_BPRED + 1, :]                # (1, OUT_PAD)
    out_ref[...] = (jnp.dot(rep.astype(jnp.bfloat16), w_pred_ref[...],
                            preferred_element_type=jnp.float32)
                    + b_pred)                                    # (B, OUT_PAD)


# ----------------------------- wrapper -----------------------------------------
def gnn_encoder_forward(counts, adj, eemb_scat, batch_oh, params):
    B = batch_oh.shape[0]
    args = (counts, params["emb_table"], adj, eemb_scat,
            params["w1_stacked"], params["w2_stacked"], params["slab"],
            batch_oh, params["w_pred_pad"])
    vmem = pl.BlockSpec(memory_space=pltpu.MemorySpace.VMEM)
    out_pad = pl.pallas_call(
        fused_gnn_encoder_kernel,
        out_shape=jax.ShapeDtypeStruct((B, OUT_PAD), jnp.float32),
        in_specs=[vmem] * len(args),
        out_specs=vmem,
    )(*args)
    return out_pad[:, :NUM_CLASS]


# ----------------------------- main ---------------------------------------------
if __name__ == "__main__":
    key = jax.random.PRNGKey(0)
    N, E, B, L = 16, 24, 2, 6   # nodes, edges, graphs, subtokens per node

    ks = jax.random.split(key, 16)

    # ----- synthetic graph data -----
    tokens = jax.random.randint(ks[0], (N, L), 1, VOCAB)            # subtoken ids
    ins_length = jax.random.randint(ks[1], (N,), 1, L + 1)          # valid lengths
    edge_index = jax.random.randint(ks[2], (2, E), 0, N)            # [src; dst]
    edge_attr = jax.random.randint(ks[3], (E,), 0, NUM_EDGE_TYPE)   # edge type ids
    batch = (jnp.arange(N) >= N // 2).astype(jnp.int32)             # node -> graph id

    # glue: bag-of-words counts per node (masked by ins_length); exact in bf16
    tok_mask = (jnp.arange(L)[None, :] < ins_length[:, None]).astype(jnp.float32)
    counts = (jax.nn.one_hot(tokens, VOCAB, dtype=jnp.float32)
              * tok_mask[..., None]).sum(axis=1)                    # (N, VOCAB)
    counts = counts.astype(jnp.bfloat16)

    # glue: precomputed dense message-passing operators (review item #1)
    src_oh = jax.nn.one_hot(edge_index[0], N, dtype=jnp.float32)    # (E, N)
    dst_oh = jax.nn.one_hot(edge_index[1], N, dtype=jnp.float32)    # (E, N)
    adj = (dst_oh.T @ src_oh).astype(jnp.bfloat16)                  # (N, N), small ints
    edge_table = jax.random.normal(ks[5], (NUM_EDGE_TYPE, D), jnp.float32) * 0.1
    edge_emb = jnp.take(edge_table, edge_attr, axis=0)              # (E, D)
    eemb_scat = dst_oh.T @ edge_emb                                 # (N, D) f32

    # pooling operators
    batch_oh_f32 = jax.nn.one_hot(batch, B, dtype=jnp.float32).T    # (B, N)
    inv_cnt = 1.0 / jnp.maximum(batch_oh_f32.sum(axis=1, keepdims=True), 1.0)  # (B,1)
    batch_oh = batch_oh_f32.astype(jnp.bfloat16)
    pool_scale = jnp.concatenate(
        [jnp.ones((B, D), jnp.float32), jnp.broadcast_to(inv_cnt, (B, D))], axis=1)

    # ----- deterministic parameters -----
    emb_table = (jax.random.normal(ks[4], (VOCAB, D), jnp.float32) * 0.1
                 ).astype(jnp.bfloat16)

    w1s, b1s, w2s, b2s, gammas, betas = [], [], [], [], [], []
    for layer in range(NUM_LAYER):
        kw = jax.random.split(ks[6 + layer], 4)
        w1s.append((jax.random.normal(kw[0], (D, HID), jnp.float32)
                    * (1.0 / jnp.sqrt(D))).astype(jnp.bfloat16))
        b1s.append(jnp.zeros((HID,), jnp.float32))
        w2s.append((jax.random.normal(kw[1], (HID, D), jnp.float32)
                    * (1.0 / jnp.sqrt(HID))).astype(jnp.bfloat16))
        b2s.append(jnp.zeros((D,), jnp.float32))
        gammas.append(jnp.ones((D,), jnp.float32))
        betas.append(jnp.zeros((D,), jnp.float32))
    w1_stacked = jnp.stack(w1s)                                     # (L, D, HID) bf16
    w2_stacked = jnp.stack(w2s)                                     # (L, HID, D) bf16

    # prediction_linear: (2*D -> NUM_CLASS), padded to OUT_PAD lanes for an
    # unmasked store; sliced back to NUM_CLASS in the wrapper.
    w_pred = jax.random.normal(ks[10], (2 * D, NUM_CLASS), jnp.float32) \
        * (1.0 / jnp.sqrt(2 * D))
    w_pred_pad = jnp.zeros((2 * D, OUT_PAD), jnp.float32).at[:, :NUM_CLASS] \
        .set(w_pred).astype(jnp.bfloat16)
    b_pred_pad = jnp.zeros((OUT_PAD,), jnp.float32)

    # pack all tiny vectors into one lane-dense slab (review item #3)
    slab = jnp.zeros((ROW_POOL + B, OUT_PAD), jnp.float32)
    for layer in range(NUM_LAYER):
        slab = slab.at[4 * layer + 0, :HID].set(b1s[layer])
        slab = slab.at[4 * layer + 1, :D].set(b2s[layer])
        slab = slab.at[4 * layer + 2, :D].set(gammas[layer])
        slab = slab.at[4 * layer + 3, :D].set(betas[layer])
    slab = slab.at[ROW_BPRED, :].set(b_pred_pad)
    slab = slab.at[ROW_POOL:ROW_POOL + B, :2 * D].set(pool_scale)

    params = {"emb_table": emb_table, "w1_stacked": w1_stacked,
              "w2_stacked": w2_stacked, "slab": slab,
              "w_pred_pad": w_pred_pad}

    out = gnn_encoder_forward(counts, adj, eemb_scat, batch_oh, params)
    jax.block_until_ready(out)
    assert out.shape == (B, NUM_CLASS) and out.dtype == jnp.float32
    assert bool(jnp.all(jnp.isfinite(out)))
    print("KERNEL_OK")
</pallas_src>

<mosaic_0001>
module attributes {stable_mosaic.version = 11 : i64} {
  func.func @fused_gnn_encoder_kernel(%arg0: memref<16x64xbf16, #tpu.memory_space<vmem>>, %arg1: memref<64x32xbf16, #tpu.memory_space<vmem>>, %arg2: memref<16x16xbf16, #tpu.memory_space<vmem>>, %arg3: memref<16x32xf32, #tpu.memory_space<vmem>>, %arg4: memref<2x32x64xbf16, #tpu.memory_space<vmem>>, %arg5: memref<2x64x32xbf16, #tpu.memory_space<vmem>>, %arg6: memref<11x128xf32, #tpu.memory_space<vmem>>, %arg7: memref<2x16xbf16, #tpu.memory_space<vmem>>, %arg8: memref<64x128xbf16, #tpu.memory_space<vmem>>, %arg9: memref<2x128xf32, #tpu.memory_space<vmem>>) attributes {dimension_semantics = [], scalar_prefetch = 0 : i64, scratch_operands = 0 : i64, tpu.core_type = #tpu.core_type<tc>} {
    %c0 = arith.constant 0 : index
    %c0_0 = arith.constant 0 : index
    %0 = vector.load %arg0[%c0, %c0_0] : memref<16x64xbf16, #tpu.memory_space<vmem>>, vector<16x64xbf16>
    %c0_1 = arith.constant 0 : index
    %c0_2 = arith.constant 0 : index
    %1 = vector.load %arg1[%c0_1, %c0_2] : memref<64x32xbf16, #tpu.memory_space<vmem>>, vector<64x32xbf16>
    %cst = arith.constant dense<0.000000e+00> : vector<16x32xf32>
    %2 = tpu.matmul %0, %1, %cst {dimension_numbers = #tpu.dot_dimension_numbers<[1], [0], [0], [1], [0, 0, 1, 1], [], []>} : vector<16x64xbf16>, vector<64x32xbf16>, vector<16x32xf32> -> vector<16x32xf32>
    %3 = arith.truncf %2 : vector<16x32xf32> to vector<16x32xbf16>
    %c0_3 = arith.constant 0 : index
    %c0_4 = arith.constant 0 : index
    %4 = vector.load %arg2[%c0_3, %c0_4] : memref<16x16xbf16, #tpu.memory_space<vmem>>, vector<16x16xbf16>
    %c0_5 = arith.constant 0 : index
    %c0_6 = arith.constant 0 : index
    %5 = vector.load %arg3[%c0_5, %c0_6] : memref<16x32xf32, #tpu.memory_space<vmem>>, vector<16x32xf32>
    %c0_7 = arith.constant 0 : index
    %c0_8 = arith.constant 0 : index
    %6 = vector.load %arg6[%c0_7, %c0_8] : memref<11x128xf32, #tpu.memory_space<vmem>>, vector<1x64xf32>
    %c1 = arith.constant 1 : index
    %c0_9 = arith.constant 0 : index
    %7 = vector.load %arg6[%c1, %c0_9] : memref<11x128xf32, #tpu.memory_space<vmem>>, vector<1x32xf32>
    %c2 = arith.constant 2 : index
    %c0_10 = arith.constant 0 : index
    %8 = vector.load %arg6[%c2, %c0_10] : memref<11x128xf32, #tpu.memory_space<vmem>>, vector<1x32xf32>
    %c3 = arith.constant 3 : index
    %c0_11 = arith.constant 0 : index
    %9 = vector.load %arg6[%c3, %c0_11] : memref<11x128xf32, #tpu.memory_space<vmem>>, vector<1x32xf32>
    %cst_12 = arith.constant dense<0.000000e+00> : vector<16x32xf32>
    %10 = tpu.matmul %4, %3, %cst_12 {dimension_numbers = #tpu.dot_dimension_numbers<[1], [0], [0], [1], [0, 0, 1, 1], [], []>} : vector<16x16xbf16>, vector<16x32xbf16>, vector<16x32xf32> -> vector<16x32xf32>
    %11 = arith.addf %2, %10 : vector<16x32xf32>
    %12 = arith.addf %11, %5 : vector<16x32xf32>
    %13 = arith.truncf %12 : vector<16x32xf32> to vector<16x32xbf16>
    %c0_13 = arith.constant 0 : index
    %c0_14 = arith.constant 0 : index
    %c0_15 = arith.constant 0 : index
    %14 = vector.load %arg4[%c0_13, %c0_14, %c0_15] : memref<2x32x64xbf16, #tpu.memory_space<vmem>>, vector<1x32x64xbf16>
    %15 = vector.shape_cast %14 : vector<1x32x64xbf16> to vector<32x64xbf16>
    %cst_16 = arith.constant dense<0.000000e+00> : vector<16x64xf32>
    %16 = tpu.matmul %13, %15, %cst_16 {dimension_numbers = #tpu.dot_dimension_numbers<[1], [0], [0], [1], [0, 0, 1, 1], [], []>} : vector<16x32xbf16>, vector<32x64xbf16>, vector<16x64xf32> -> vector<16x64xf32>
    %17 = vector.broadcast %6 : vector<1x64xf32> to vector<16x64xf32>
    %18 = arith.addf %16, %17 : vector<16x64xf32>
    %cst_17 = arith.constant 0.000000e+00 : f32
    %19 = vector.broadcast %cst_17 : f32 to vector<16x64xf32>
    %20 = arith.maximumf %18, %19 : vector<16x64xf32>
    %21 = arith.truncf %20 : vector<16x64xf32> to vector<16x64xbf16>
    %c0_18 = arith.constant 0 : index
    %c0_19 = arith.constant 0 : index
    %c0_20 = arith.constant 0 : index
    %22 = vector.load %arg5[%c0_18, %c0_19, %c0_20] : memref<2x64x32xbf16, #tpu.memory_space<vmem>>, vector<1x64x32xbf16>
    %23 = vector.shape_cast %22 : vector<1x64x32xbf16> to vector<64x32xbf16>
    %cst_21 = arith.constant dense<0.000000e+00> : vector<16x32xf32>
    %24 = tpu.matmul %21, %23, %cst_21 {dimension_numbers = #tpu.dot_dimension_numbers<[1], [0], [0], [1], [0, 0, 1, 1], [], []>} : vector<16x64xbf16>, vector<64x32xbf16>, vector<16x32xf32> -> vector<16x32xf32>
    %25 = vector.broadcast %7 : vector<1x32xf32> to vector<16x32xf32>
    %26 = arith.addf %24, %25 : vector<16x32xf32>
    %cst_22 = arith.constant dense<0.000000e+00> : vector<32xf32>
    %27 = vector.multi_reduction <add>, %26, %cst_22 [0] : vector<16x32xf32> to vector<32xf32>
    %28 = vector.shape_cast %27 : vector<32xf32> to vector<1x32xf32>
    %cst_23 = arith.constant 1.600000e+01 : f32
    %29 = vector.broadcast %cst_23 : f32 to vector<1x32xf32>
    %30 = arith.divf %28, %29 : vector<1x32xf32>
    %31 = arith.mulf %26, %26 : vector<16x32xf32>
    %cst_24 = arith.constant dense<0.000000e+00> : vector<32xf32>
    %32 = vector.multi_reduction <add>, %31, %cst_24 [0] : vector<16x32xf32> to vector<32xf32>
    %33 = vector.shape_cast %32 : vector<32xf32> to vector<1x32xf32>
    %cst_25 = arith.constant 1.600000e+01 : f32
    %34 = vector.broadcast %cst_25 : f32 to vector<1x32xf32>
    %35 = arith.divf %33, %34 : vector<1x32xf32>
    %36 = arith.mulf %30, %30 : vector<1x32xf32>
    %37 = arith.subf %35, %36 : vector<1x32xf32>
    %cst_26 = arith.constant 0.000000e+00 : f32
    %38 = vector.broadcast %cst_26 : f32 to vector<1x32xf32>
    %39 = arith.maximumf %37, %38 : vector<1x32xf32>
    %40 = vector.broadcast %30 : vector<1x32xf32> to vector<16x32xf32>
    %41 = arith.subf %26, %40 : vector<16x32xf32>
    %cst_27 = arith.constant 9.99999974E-6 : f32
    %42 = vector.broadcast %cst_27 : f32 to vector<1x32xf32>
    %43 = arith.addf %39, %42 : vector<1x32xf32>
    %44 = math.rsqrt %43 : vector<1x32xf32>
    %45 = vector.broadcast %44 : vector<1x32xf32> to vector<16x32xf32>
    %46 = arith.mulf %41, %45 : vector<16x32xf32>
    %47 = vector.broadcast %8 : vector<1x32xf32> to vector<16x32xf32>
    %48 = arith.mulf %47, %46 : vector<16x32xf32>
    %49 = vector.broadcast %9 : vector<1x32xf32> to vector<16x32xf32>
    %50 = arith.addf %48, %49 : vector<16x32xf32>
    %cst_28 = arith.constant 0.000000e+00 : f32
    %51 = vector.broadcast %cst_28 : f32 to vector<16x32xf32>
    %52 = arith.maximumf %50, %51 : vector<16x32xf32>
    %53 = arith.truncf %52 : vector<16x32xf32> to vector<16x32xbf16>
    %c4 = arith.constant 4 : index
    %c0_29 = arith.constant 0 : index
    %54 = vector.load %arg6[%c4, %c0_29] : memref<11x128xf32, #tpu.memory_space<vmem>>, vector<1x64xf32>
    %c5 = arith.constant 5 : index
    %c0_30 = arith.constant 0 : index
    %55 = vector.load %arg6[%c5, %c0_30] : memref<11x128xf32, #tpu.memory_space<vmem>>, vector<1x32xf32>
    %c6 = arith.constant 6 : index
    %c0_31 = arith.constant 0 : index
    %56 = vector.load %arg6[%c6, %c0_31] : memref<11x128xf32, #tpu.memory_space<vmem>>, vector<1x32xf32>
    %c7 = arith.constant 7 : index
    %c0_32 = arith.constant 0 : index
    %57 = vector.load %arg6[%c7, %c0_32] : memref<11x128xf32, #tpu.memory_space<vmem>>, vector<1x32xf32>
    %cst_33 = arith.constant dense<0.000000e+00> : vector<16x32xf32>
    %58 = tpu.matmul %4, %53, %cst_33 {dimension_numbers = #tpu.dot_dimension_numbers<[1], [0], [0], [1], [0, 0, 1, 1], [], []>} : vector<16x16xbf16>, vector<16x32xbf16>, vector<16x32xf32> -> vector<16x32xf32>
    %59 = arith.addf %52, %58 : vector<16x32xf32>
    %60 = arith.addf %59, %5 : vector<16x32xf32>
    %61 = arith.truncf %60 : vector<16x32xf32> to vector<16x32xbf16>
    %c1_34 = arith.constant 1 : index
    %c0_35 = arith.constant 0 : index
    %c0_36 = arith.constant 0 : index
    %62 = vector.load %arg4[%c1_34, %c0_35, %c0_36] : memref<2x32x64xbf16, #tpu.memory_space<vmem>>, vector<1x32x64xbf16>
    %63 = vector.shape_cast %62 : vector<1x32x64xbf16> to vector<32x64xbf16>
    %cst_37 = arith.constant dense<0.000000e+00> : vector<16x64xf32>
    %64 = tpu.matmul %61, %63, %cst_37 {dimension_numbers = #tpu.dot_dimension_numbers<[1], [0], [0], [1], [0, 0, 1, 1], [], []>} : vector<16x32xbf16>, vector<32x64xbf16>, vector<16x64xf32> -> vector<16x64xf32>
    %65 = vector.broadcast %54 : vector<1x64xf32> to vector<16x64xf32>
    %66 = arith.addf %64, %65 : vector<16x64xf32>
    %cst_38 = arith.constant 0.000000e+00 : f32
    %67 = vector.broadcast %cst_38 : f32 to vector<16x64xf32>
    %68 = arith.maximumf %66, %67 : vector<16x64xf32>
    %69 = arith.truncf %68 : vector<16x64xf32> to vector<16x64xbf16>
    %c1_39 = arith.constant 1 : index
    %c0_40 = arith.constant 0 : index
    %c0_41 = arith.constant 0 : index
    %70 = vector.load %arg5[%c1_39, %c0_40, %c0_41] : memref<2x64x32xbf16, #tpu.memory_space<vmem>>, vector<1x64x32xbf16>
    %71 = vector.shape_cast %70 : vector<1x64x32xbf16> to vector<64x32xbf16>
    %cst_42 = arith.constant dense<0.000000e+00> : vector<16x32xf32>
    %72 = tpu.matmul %69, %71, %cst_42 {dimension_numbers = #tpu.dot_dimension_numbers<[1], [0], [0], [1], [0, 0, 1, 1], [], []>} : vector<16x64xbf16>, vector<64x32xbf16>, vector<16x32xf32> -> vector<16x32xf32>
    %73 = vector.broadcast %55 : vector<1x32xf32> to vector<16x32xf32>
    %74 = arith.addf %72, %73 : vector<16x32xf32>
    %cst_43 = arith.constant dense<0.000000e+00> : vector<32xf32>
    %75 = vector.multi_reduction <add>, %74, %cst_43 [0] : vector<16x32xf32> to vector<32xf32>
    %76 = vector.shape_cast %75 : vector<32xf32> to vector<1x32xf32>
    %cst_44 = arith.constant 1.600000e+01 : f32
    %77 = vector.broadcast %cst_44 : f32 to vector<1x32xf32>
    %78 = arith.divf %76, %77 : vector<1x32xf32>
    %79 = arith.mulf %74, %74 : vector<16x32xf32>
    %cst_45 = arith.constant dense<0.000000e+00> : vector<32xf32>
    %80 = vector.multi_reduction <add>, %79, %cst_45 [0] : vector<16x32xf32> to vector<32xf32>
    %81 = vector.shape_cast %80 : vector<32xf32> to vector<1x32xf32>
    %cst_46 = arith.constant 1.600000e+01 : f32
    %82 = vector.broadcast %cst_46 : f32 to vector<1x32xf32>
    %83 = arith.divf %81, %82 : vector<1x32xf32>
    %84 = arith.mulf %78, %78 : vector<1x32xf32>
    %85 = arith.subf %83, %84 : vector<1x32xf32>
    %cst_47 = arith.constant 0.000000e+00 : f32
    %86 = vector.broadcast %cst_47 : f32 to vector<1x32xf32>
    %87 = arith.maximumf %85, %86 : vector<1x32xf32>
    %88 = vector.broadcast %78 : vector<1x32xf32> to vector<16x32xf32>
    %89 = arith.subf %74, %88 : vector<16x32xf32>
    %cst_48 = arith.constant 9.99999974E-6 : f32
    %90 = vector.broadcast %cst_48 : f32 to vector<1x32xf32>
    %91 = arith.addf %87, %90 : vector<1x32xf32>
    %92 = math.rsqrt %91 : vector<1x32xf32>
    %93 = vector.broadcast %92 : vector<1x32xf32> to vector<16x32xf32>
    %94 = arith.mulf %89, %93 : vector<16x32xf32>
    %95 = vector.broadcast %56 : vector<1x32xf32> to vector<16x32xf32>
    %96 = arith.mulf %95, %94 : vector<16x32xf32>
    %97 = vector.broadcast %57 : vector<1x32xf32> to vector<16x32xf32>
    %98 = arith.addf %96, %97 : vector<16x32xf32>
    %99 = arith.truncf %98 : vector<16x32xf32> to vector<16x32xbf16>
    %100 = tpu.concatenate %3, %99 in 1 : vector<16x32xbf16>, vector<16x32xbf16> -> vector<16x64xbf16>
    %c9 = arith.constant 9 : index
    %c0_49 = arith.constant 0 : index
    %101 = vector.load %arg6[%c9, %c0_49] : memref<11x128xf32, #tpu.memory_space<vmem>>, vector<2x64xf32>
    %c0_50 = arith.constant 0 : index
    %c0_51 = arith.constant 0 : index
    %102 = vector.load %arg7[%c0_50, %c0_51] : memref<2x16xbf16, #tpu.memory_space<vmem>>, vector<2x16xbf16>
    %cst_52 = arith.constant dense<0.000000e+00> : vector<2x64xf32>
    %103 = tpu.matmul %102, %100, %cst_52 {dimension_numbers = #tpu.dot_dimension_numbers<[1], [0], [0], [1], [0, 0, 1, 1], [], []>} : vector<2x16xbf16>, vector<16x64xbf16>, vector<2x64xf32> -> vector<2x64xf32>
    %104 = arith.mulf %103, %101 : vector<2x64xf32>
    %c8 = arith.constant 8 : index
    %c0_53 = arith.constant 0 : index
    %105 = vector.load %arg6[%c8, %c0_53] : memref<11x128xf32, #tpu.memory_space<vmem>>, vector<1x128xf32>
    %106 = arith.truncf %104 : vector<2x64xf32> to vector<2x64xbf16>
    %c0_54 = arith.constant 0 : index
    %c0_55 = arith.constant 0 : index
    %107 = vector.load %arg8[%c0_54, %c0_55] : memref<64x128xbf16, #tpu.memory_space<vmem>>, vector<64x128xbf16>
    %cst_56 = arith.constant dense<0.000000e+00> : vector<2x128xf32>
    %108 = tpu.matmul %106, %107, %cst_56 {dimension_numbers = #tpu.dot_dimension_numbers<[1], [0], [0], [1], [0, 0, 1, 1], [], []>} : vector<2x64xbf16>, vector<64x128xbf16>, vector<2x128xf32> -> vector<2x128xf32>
    %109 = vector.broadcast %105 : vector<1x128xf32> to vector<2x128xf32>
    %110 = arith.addf %108, %109 : vector<2x128xf32>
    %c0_57 = arith.constant 0 : index
    %c0_58 = arith.constant 0 : index
    %111 = vector.load %arg9[%c0_57, %c0_58] : memref<2x128xf32, #tpu.memory_space<vmem>>, vector<2x128xf32>
    tpu.vector_store %arg9[%c0_57, %c0_58], %110 {strides = array<i32>} : memref<2x128xf32, #tpu.memory_space<vmem>>, vector<2x128xf32>,
    return
  }
}

</mosaic_0001>

<bundles_post_ra>
// kernel: tpu_custom_call.1
= control target key start
LH: loop header
LB: loop body
LE: loop exit
PB: predicated region body
PF: predicated region fallthrough
CT: control target
= control target key end

     0   :  { %v987_v1 = vmov 0.0   ;;  %vm988_vm0 = vmmov 0   ;;  %vm73_vm1 = vcmask 523264   ;;  %s1224_s0 = inlined_call_operand.vmem [shape: bf16[16,64], index: 0, kind: input, shape index: {}]   ;;  %s1225_s1 = inlined_call_operand.vmem [shape: bf16[64,32], index: 1, kind: input, shape index: {}]   ;;  %s1226_s2 = inlined_call_operand.vmem [shape: bf16[16,16], index: 2, kind: input, shape index: {}]   ;;  %s1227_s3 = inlined_call_operand.vmem [shape: f32[16,32], index: 3, kind: input, shape index: {}]   ;;  %s1228_s4 = inlined_call_operand.vmem [shape: bf16[2,32,64], index: 4, kind: input, shape index: {}]   ;;  %s1229_s5 = inlined_call_operand.vmem [shape: bf16[2,64,32], index: 5, kind: input, shape index: {}]   ;;  %s1230_s6 = inlined_call_operand.vmem [shape: f32[11,128], index: 6, kind: input, shape index: {}]   ;;  %s1231_s7 = inlined_call_operand.vmem [shape: bf16[2,16], index: 7, kind: input, shape index: {}]   ;;  %s1232_s8 = inlined_call_operand.vmem [shape: bf16[64,128], index: 8, kind: input, shape index: {}]   ;;  %s1233_s9 = inlined_call_operand.hbm [shape: f32[2,128], index: 9, kind: output, shape index: {}]  }
   0x1   :  { %v939_v0 = vld [vmem:[%s1225_s1 + $0x18] sm:$0xff]   ;;  %853 = vmatprep.subr.bf16.mxu0 %v987_v1  ;;  %865 = vmatprep.subr.bf16.mxu1 %v987_v1  ;;  %v940_v2 = vld [vmem:[%s1225_s1 + $0x10] sm:$0xff]   ;;  %v941_v3 = vld [vmem:[%s1225_s1 + $0x8] sm:$0xff]  }
   0x2   :  { %854 = vmatpush3.bf16.msra.mxu0 %v939_v0  ;;  %861 = vmatprep.mubr.msk.bf16.mxu0 %vm988_vm0, %v987_v1  ;;  %v942_v4 = vld [vmem:[%s1225_s1] sm:$0xff]  }
   0x3   :  { %855 = vmatprep.subr.bf16.mxu0 %v987_v1  ;;  %867 = vmatprep.mubr.msk.bf16.mxu1 %vm988_vm0, %v987_v1  ;;  %v943_v5 = vld [vmem:[%s1224_s0] sm:$0xff]  }
   0x6   :  { %856 = vmatpush3.bf16.msra.mxu0 %v940_v2 }
   0x7   :  { %857 = vmatprep.subr.bf16.mxu0 %v987_v1 }
   0xa   :  { %858 = vmatpush3.bf16.msra.mxu0 %v941_v3 }
   0xb   :  { %859 = vmatprep.subr.bf16.mxu0 %v987_v1 }
   0xe   :  { %860 = vmatpush3.bf16.msra.mxu0 %v942_v4 }
   0xf   :  { %897 = vmatprep.subr.bf16.mxu0 %v987_v1 }
  0x10   :  { %14 = vsyncpa [#allocation3], 0  ;;  %v1074_v11 = vld [vmem:[%s1226_s2] sm:$0xff]   ;;  %vm132_vm2 = vcmask 130048   ;;  %v945_v12 = vld [vmem:[%s1228_s4 + $0x8] sm:$0xff]   ;;  %vm202_vm3 = vcmask 261120  }
  0x11   :  { %862 = vmatmul.mubr.msk.bf16.vlgmr.msra.gmra.mxu0 %vm73_vm1, %v943_v5  ;;  %v946_v13 = vld [vmem:[%s1228_s4] sm:$0xff]   ;;  %v1098_v18 = vld [vmem:[%s1227_s3 + $0x8] sm:$0xff]  ;;  %v947_v24 = vld [vmem:[%s1229_s5 + $0x18] sm:$0xff]   ;;  %s989_s13 = smov 32   ;;  %s990_s23 = smov [#allocation2]  }
  0x12   :  { %901 = vmatprep.mubr.msk.bf16.mxu0 %vm988_vm0, %v987_v1  ;;  %v1093_v17 = vld [vmem:[%s1227_s3] sm:$0xff]  ;;  %v948_v26 = vld [vmem:[%s1229_s5 + $0x10] sm:$0xff]   ;;  %v949_v27 = vld [vmem:[%s1229_s5 + $0x8] sm:$0xff]   ;;  %s761_s24 = sshll.u32 %s990_s23, 4  ;;  %s762_s24 = int_to_ptr.vmem [resolvable:$true] %s761_s24 }
  0x13   :  { %v950_v28 = vld [vmem:[%s1229_s5] sm:$0xff]   ;;  %p970_p1 = scmp.lt.s32.totalorder %s762_s24, %s762_s24 }
  0x14   :  { %v777_v29 = vld [vmem:[%s1230_s6] ss:$0 sm:$0xff]  ;;  %v781_v39 = vld [vmem:[%s1230_s6 + $0x1] ss:$0 sm:$0xff] }
  0xd1   :  { %v111_v6 = vpop.f32.mrf.mxu0 }
  0xd3   :  { %v863_v7 = vpop.f32.mrf.mxu0 }
  0xd5   :  { %v114_v8 = vpop.f32.mrf.mxu0 }
  0xd6   :  { %v1069_v9 = vpack.c.bf16 %v114_v8, %v111_v6 }
  0xd7   :  { %v864_v10 = vpop.f32.mrf.mxu0 }
  0xd8   :  { %866 = vmatpush3.bf16.msra.mxu1 %v1069_v9 }
  0xd9   :  { %871 = vmatprep.subr.bf16.mxu1 %v987_v1 }
  0xdb   :  { %868 = vmatmul.mubr.msk.bf16.vlgmr.msra.gmra.mxu1 %vm132_vm2, %v1074_v11 }
  0xdc   :  { %875 = vmatprep.mubr.msk.bf16.mxu1 %vm988_vm0, %v987_v1  ;;  %872 = vmatpush3.bf16.msra.mxu1 %v945_v12 }
  0xdd   :  { %873 = vmatprep.subr.bf16.mxu1 %v987_v1 }
  0xe0   :  { %874 = vmatpush3.bf16.msra.mxu1 %v946_v13 }
  0xe1   :  { %879 = vmatprep.subr.bf16.mxu1 %v987_v1 }
 0x19b   :  { %v170_v14 = vpop.f32.mrf.mxu1 }
 0x19c   :  { %v177_v16 = vadd.f32 %v170_v14, %v111_v6  ;;  %v787_v14 = vld [vmem:[%s1230_s6 + $0x2] ss:$0 sm:$0xff] }
 0x19d   :  { %v869_v15 = vpop.f32.mrf.mxu1 }
 0x19e   :  { %v179_v22 = vadd.f32 %v177_v16, %v1093_v17 }
 0x19f   :  { %v173_v19 = vpop.f32.mrf.mxu1 }
 0x1a0   :  { %v178_v20 = vadd.f32 %v173_v19, %v114_v8  ;;  %v788_v19 = vld [vmem:[%s1230_s6 + $0x3] ss:$0 sm:$0xff] }
 0x1a1   :  { %v870_v21 = vpop.f32.mrf.mxu1 }
 0x1a2   :  { %v180_v23 = vadd.f32 %v178_v20, %v1098_v18 }
 0x1a4   :  { %v181_v25 = vpack.c.bf16 %v180_v23, %v179_v22 }
 0x1a6   :  { %876 = vmatmul.mubr.msk.bf16.vlgmr.msra.gmra.mxu1 %vm202_vm3, %v181_v25 }
 0x1a7   :  { %880 = vmatpush3.bf16.msra.mxu1 %v947_v24  ;;  %887 = vmatprep.mubr.msk.bf16.mxu1 %vm988_vm0, %v987_v1 }
 0x1a8   :  { %881 = vmatprep.subr.bf16.mxu1 %v987_v1 }
 0x1ab   :  { %882 = vmatpush3.bf16.msra.mxu1 %v948_v26 }
 0x1ac   :  { %883 = vmatprep.subr.bf16.mxu1 %v987_v1 }
 0x1af   :  { %884 = vmatpush3.bf16.msra.mxu1 %v949_v27  ;;  %v951_v27 = vld [vmem:[%s1228_s4 + $0x18] sm:$0xff]  }
 0x1b0   :  { %885 = vmatprep.subr.bf16.mxu1 %v987_v1  ;;  %898 = vmatpush3.bf16.msra.mxu0 %v951_v27 }
 0x1b1   :  { %899 = vmatprep.subr.bf16.mxu0 %v987_v1 }
 0x1b3   :  { %886 = vmatpush3.bf16.msra.mxu1 %v950_v28  ;;  %v952_v28 = vld [vmem:[%s1228_s4 + $0x10] sm:$0xff]  }
 0x1b4   :  { %891 = vmatprep.subr.bf16.mxu1 %v987_v1  ;;  %900 = vmatpush3.bf16.msra.mxu0 %v952_v28 }
 0x1b5   :  { %917 = vmatprep.subr.bf16.mxu0 %v987_v1 }
 0x266   :  { %v240_v30 = vpop.f32.mrf.mxu1 }
 0x267   :  { %v241_v32 = vadd.f32 %v777_v29, %v240_v30 }
 0x268   :  { %v877_v31 = vpop.f32.mrf.mxu1 }
 0x269   :  { %v247_v36 = vmax.f32 %v241_v32, 0.0 }
 0x26a   :  { %v243_v33 = vpop.f32.mrf.mxu1 }
 0x26b   :  { %v244_v34 = vadd.f32 %v777_v29, %v243_v33 }
 0x26c   :  { %v878_v35 = vpop.f32.mrf.mxu1 }
 0x26d   :  { %v248_v37 = vmax.f32 %v244_v34, 0.0 }
 0x26f   :  { %v249_v38 = vpack.c.bf16 %v248_v37, %v247_v36 }
 0x271   :  { %888 = vmatmul.mubr.msk.bf16.vlgmr.msra.gmra.mxu1 %vm73_vm1, %v249_v38  ;;  %v954_v38 = vld [vmem:[%s1229_s5 + $0x30] sm:$0xff]  }
 0x272   :  { %893 = vmatprep.mubr.msk.bf16.mxu1 %vm988_vm0, %v987_v1 }
 0x331   :  { %v323_v40 = vpop.f32.mrf.mxu1 }
 0x332   :  { %v324_v41 = vadd.f32 %v781_v39, %v323_v40 }
 0x333   :  { %v889_v42 = vpop.f32.mrf.mxu1 }
 0x334   :  { %v341_v44 = vmul.f32 %v324_v41, %v324_v41  ;;  %v330_v47 = vsel %vm202_vm3, %v324_v41, 0.0 }
 0x335   :  { %v326_v43 = vpop.f32.mrf.mxu1 }
 0x336   :  { %v327_v45 = vadd.f32 %v781_v39, %v326_v43  ;;  %v343_v51 = vsel %vm202_vm3, %v341_v44, 0.0  ;;  %v955_v39 = vld [vmem:[%s1229_s5 + $0x28] sm:$0xff]  }
 0x337   :  { %v890_v46 = vpop.f32.mrf.mxu1 }
 0x338   :  { %v331_v48 = vsel %vm202_vm3, %v327_v45, 0.0  ;;  %v342_v49 = vmul.f32 %v327_v45, %v327_v45 }
 0x339   :  { %v332_v50 = vadd.f32 %v331_v48, %v330_v47 }
 0x33a   :  { %v344_v52 = vsel %vm202_vm3, %v342_v49, 0.0  ;;  %v806_v49 = vld [vmem:[%s1230_s6 + $0x5] ss:$0 sm:$0xff] }
 0x33b   :  { %v333_v53 = vrot.slane %v332_v50, 4  ;;  %v345_v54 = vadd.f32 %v344_v52, %v343_v51 }
 0x33d   :  { %v334_v55 = vadd.f32 %v333_v53, %v332_v50  ;;  %v346_v56 = vrot.slane %v345_v54, 4 }
 0x33f   :  { %v335_v57 = vrot.slane %v334_v55, 2  ;;  %v347_v58 = vadd.f32 %v346_v56, %v345_v54 }
 0x341   :  { %v336_v59 = vadd.f32 %v335_v57, %v334_v55  ;;  %v348_v60 = vrot.slane %v347_v58, 2 }
 0x343   :  { %v337_v61 = vrot.slane %v336_v59, 1  ;;  %v349_v62 = vadd.f32 %v348_v60, %v347_v58 }
 0x345   :  { %v338_v63 = vadd.f32 %v337_v61, %v336_v59  ;;  %v350_v0 = vrot.slane %v349_v62, 1 }
 0x347   :  { %v340_v2 = vmul.f32 0.0625, %v338_v63  ;;  %v351_v3 = vadd.f32 %v350_v0, %v349_v62 }
 0x349   :  { %v352_v4 = vmul.f32 0.0625, %v351_v3  ;;  %v353_v5 = vmul.f32 %v340_v2, %v340_v2  ;;  %v356_v10 = vsub.f32 %v324_v41, %v340_v2  ;;  %v357_v12 = vsub.f32 %v327_v45, %v340_v2 }
 0x34b   :  { %v354_v6 = vsub.f32 %v352_v4, %v353_v5 }
 0x34d   :  { %v355_v7 = vmax.f32 %v354_v6, 0.0 }
 0x34f   :  { %v358_v8 = vadd.f32 1e-05, %v355_v7 }
 0x351   :  { %961 = vrsqrt.f32 %v358_v8 }
 0x35e   :  { %v962_v13 = vpop.eup %961 }
 0x35f   :  { %v360_v15 = vmul.f32 %v962_v13, %v356_v10  ;;  %v361_v16 = vmul.f32 %v962_v13, %v357_v12 }
 0x361   :  { %v366_v20 = vmul.f32 %v787_v14, %v360_v15  ;;  %v367_v21 = vmul.f32 %v787_v14, %v361_v16 }
 0x363   :  { %v372_v22 = vadd.f32 %v788_v19, %v366_v20  ;;  %v373_v23 = vadd.f32 %v788_v19, %v367_v21 }
 0x365   :  { %v374_v24 = vmax.f32 %v372_v22, 0.0  ;;  %v375_v25 = vmax.f32 %v373_v23, 0.0 }
 0x367   :  { %v376_v26 = vpack.c.bf16 %v375_v25, %v374_v24 }
 0x369   :  { %892 = vmatpush3.bf16.msra.mxu1 %v376_v26  ;;  %v812_v26 = vld [vmem:[%s1230_s6 + $0x6] ss:$0 sm:$0xff] }
 0x36a   :  { %905 = vmatprep.subr.bf16.mxu1 %v987_v1 }
 0x36c   :  { %894 = vmatmul.mubr.msk.bf16.vlgmr.msra.gmra.mxu1 %vm132_vm2, %v1074_v11  ;;  %v953_v11 = vld [vmem:[%s1229_s5 + $0x38] sm:$0xff]  }
 0x36d   :  { %913 = vmatprep.mubr.msk.bf16.mxu1 %vm988_vm0, %v987_v1  ;;  %906 = vmatpush3.bf16.msra.mxu1 %v953_v11  ;;  %v813_v11 = vld [vmem:[%s1230_s6 + $0x7] ss:$0 sm:$0xff] }
 0x36e   :  { %907 = vmatprep.subr.bf16.mxu1 %v987_v1 }
 0x371   :  { %908 = vmatpush3.bf16.msra.mxu1 %v954_v38  ;;  %v958_v38 = vld [vmem:[%s1232_s8 + $0x10] sm:$0xff]  }
 0x372   :  { %909 = vmatprep.subr.bf16.mxu1 %v987_v1 }
 0x375   :  { %910 = vmatpush3.bf16.msra.mxu1 %v955_v39  ;;  %v960_v39 = vld [vmem:[%s1232_s8] sm:$0xff]  }
 0x376   :  { %911 = vmatprep.subr.bf16.mxu1 %v987_v1 }
 0x42c   :  { %v415_v29 = vpop.f32.mrf.mxu1 }
 0x42d   :  { %v422_v31 = vadd.f32 %v415_v29, %v374_v24 }
 0x42e   :  { %v895_v30 = vpop.f32.mrf.mxu1 }
 0x42f   :  { %v424_v35 = vadd.f32 %v422_v31, %v1093_v17  ;;  %v956_v17 = vld [vmem:[%s1229_s5 + $0x20] sm:$0xff]  }
 0x430   :  { %v418_v32 = vpop.f32.mrf.mxu1  ;;  %912 = vmatpush3.bf16.msra.mxu1 %v956_v17  ;;  %v627_v17 = vld [vmem:[%s1230_s6 + $0x9] sm:$0x3] }
 0x431   :  { %v423_v33 = vadd.f32 %v418_v32, %v375_v25 }
 0x432   :  { %v896_v34 = vpop.f32.mrf.mxu1 }
 0x433   :  { %v425_v36 = vadd.f32 %v423_v33, %v1098_v18  ;;  %v794_v18 = vld [vmem:[%s1230_s6 + $0x4] ss:$0 sm:$0xff] }
 0x435   :  { %v426_v37 = vpack.c.bf16 %v425_v36, %v424_v35  ;;  %v628_v36 = vld [vmem:[%s1231_s7] sm:$0x1] }
 0x437   :  { %902 = vmatmul.mubr.msk.bf16.vlgmr.msra.gmra.mxu0 %vm202_vm3, %v426_v37  ;;  %v957_v37 = vld [vmem:[%s1232_s8 + $0x18] sm:$0xff]  }
 0x438   :  { %919 = vmatprep.mubr.msk.bf16.mxu0 %vm988_vm0, %v987_v1 }
 0x4f7   :  { %v485_v40 = vpop.f32.mrf.mxu0 }
 0x4f8   :  { %v486_v42 = vadd.f32 %v794_v18, %v485_v40 }
 0x4f9   :  { %v903_v41 = vpop.f32.mrf.mxu0 }
 0x4fa   :  { %v492_v46 = vmax.f32 %v486_v42, 0.0 }
 0x4fb   :  { %v488_v43 = vpop.f32.mrf.mxu0 }
 0x4fc   :  { %v489_v44 = vadd.f32 %v794_v18, %v488_v43 }
 0x4fd   :  { %v904_v45 = vpop.f32.mrf.mxu0 }
 0x4fe   :  { %v493_v47 = vmax.f32 %v489_v44, 0.0 }
 0x500   :  { %v494_v48 = vpack.c.bf16 %v493_v47, %v492_v46 }
 0x502   :  { %914 = vmatmul.mubr.msk.bf16.vlgmr.msra.gmra.mxu1 %vm73_vm1, %v494_v48 }
 0x5c2   :  { %v569_v50 = vpop.f32.mrf.mxu1 }
 0x5c3   :  { %v570_v51 = vadd.f32 %v806_v49, %v569_v50 }
 0x5c4   :  { %v915_v52 = vpop.f32.mrf.mxu1 }
 0x5c5   :  { %v586_v54 = vmul.f32 %v570_v51, %v570_v51  ;;  %v576_v57 = vsel %vm202_vm3, %v570_v51, 0.0 }
 0x5c6   :  { %v572_v53 = vpop.f32.mrf.mxu1 }
 0x5c7   :  { %v573_v55 = vadd.f32 %v806_v49, %v572_v53  ;;  %v588_v61 = vsel %vm202_vm3, %v586_v54, 0.0 }
 0x5c8   :  { %v916_v56 = vpop.f32.mrf.mxu1 }
 0x5c9   :  { %v577_v58 = vsel %vm202_vm3, %v573_v55, 0.0  ;;  %v587_v59 = vmul.f32 %v573_v55, %v573_v55 }
 0x5ca   :  { %v578_v60 = vadd.f32 %v577_v58, %v576_v57 }
 0x5cb   :  { %v589_v62 = vsel %vm202_vm3, %v587_v59, 0.0 }
 0x5cc   :  { %v579_v63 = vrot.slane %v578_v60, 4  ;;  %v590_v0 = vadd.f32 %v589_v62, %v588_v61 }
 0x5ce   :  { %v580_v2 = vadd.f32 %v579_v63, %v578_v60  ;;  %v591_v3 = vrot.slane %v590_v0, 4 }
 0x5d0   :  { %v581_v4 = vrot.slane %v580_v2, 2  ;;  %v592_v5 = vadd.f32 %v591_v3, %v590_v0 }
 0x5d2   :  { %v582_v6 = vadd.f32 %v581_v4, %v580_v2  ;;  %v593_v7 = vrot.slane %v592_v5, 2 }
 0x5d4   :  { %v583_v8 = vrot.slane %v582_v6, 1  ;;  %v594_v10 = vadd.f32 %v593_v7, %v592_v5 }
 0x5d6   :  { %v584_v12 = vadd.f32 %v583_v8, %v582_v6  ;;  %v595_v13 = vrot.slane %v594_v10, 1 }
 0x5d8   :  { %v585_v14 = vmul.f32 0.0625, %v584_v12  ;;  %v596_v15 = vadd.f32 %v595_v13, %v594_v10 }
 0x5da   :  { %v597_v16 = vmul.f32 0.0625, %v596_v15  ;;  %v598_v19 = vmul.f32 %v585_v14, %v585_v14  ;;  %v602_v23 = vsub.f32 %v573_v55, %v585_v14  ;;  %v601_v24 = vsub.f32 %v570_v51, %v585_v14 }
 0x5dc   :  { %v599_v20 = vsub.f32 %v597_v16, %v598_v19 }
 0x5de   :  { %v600_v21 = vmax.f32 %v599_v20, 0.0 }
 0x5e0   :  { %v603_v22 = vadd.f32 1e-05, %v600_v21 }
 0x5e2   :  { %963 = vrsqrt.f32 %v603_v22 }
 0x5ef   :  { %v964_v25 = vpop.eup %963 }
 0x5f0   :  { %v606_v27 = vmul.f32 %v964_v25, %v602_v23  ;;  %v605_v28 = vmul.f32 %v964_v25, %v601_v24 }
 0x5f2   :  { %v611_v29 = vmul.f32 %v812_v26, %v605_v28  ;;  %v612_v30 = vmul.f32 %v812_v26, %v606_v27 }
 0x5f4   :  { %v617_v31 = vadd.f32 %v813_v11, %v611_v29  ;;  %v618_v32 = vadd.f32 %v813_v11, %v612_v30 }
 0x5f6   :  { %v619_v33 = vpack.c.bf16 %v618_v32, %v617_v31 }
 0x5f8   :  { %621 = vrot.lane.b32.xlu0 %v619_v33, %s989_s13 }
 0x66a   :  { %v622_v34 = vpop.permute.xlu0 %621 }
 0x66b   :  { %v625_v35 = vsel %vm202_vm3, %v1069_v9, %v622_v34  ;;  %v959_v9 = vld [vmem:[%s1232_s8 + $0x8] sm:$0xff]   ;;  %s965_s8 = scalar_lea.vmem %s762_s24, 32 }
 0x66c   :  { %918 = vmatpush3.bf16.msra.mxu0 %v625_v35  ;;  %p966_p0 = scmp.ne.s32.totalorder %s762_s24, %s965_s8  ;;  %p971_p2 = scmp.lt.s32.totalorder %s965_s8, %s965_s8 }
 0x66d   :  { %923 = vmatprep.subr.bf16.mxu0 %v987_v1 }
 0x66e   :  { %p972_p3 = por %p971_p2, %p970_p1 }
 0x66f   :  { %920 = vmatmul.mubr.msk.bf16.vlgmr.msra.gmra.mxu0 %vm132_vm2, %v628_v36 }
 0x670   :  { %924 = vmatpush3.bf16.msra.mxu0 %v957_v37  ;;  %931 = vmatprep.mubr.msk.bf16.mxu0 %vm988_vm0, %v987_v1  ;;  %p973_p4 = pnand %p972_p3, %p966_p0 }
 0x671   :  { %925 = vmatprep.subr.bf16.mxu0 %v987_v1 }
 0x674   :  { %926 = vmatpush3.bf16.msra.mxu0 %v958_v38 }
 0x675   :  { %927 = vmatprep.subr.bf16.mxu0 %v987_v1 }
 0x678   :  { %928 = vmatpush3.bf16.msra.mxu0 %v959_v9 }
 0x679   :  { %929 = vmatprep.subr.bf16.mxu0 %v987_v1  ;;  %v815_v1 = vld [vmem:[%s1230_s6 + $0x8] ss:$0 sm:$0xff] }
 0x67c   :  { %930 = vmatpush3.bf16.msra.mxu0 %v960_v39 }
 0x72f   :  { %v666_v18 = vpop.f32.mrf.mxu0 }
 0x730   :  { %v672_v40 = vmul.f32 %v666_v18, %v627_v17 }
 0x731   :  { %v921_v41 = vpop.f32.mrf.mxu0 }
 0x732   :  { %v674_v42 = vpack.c.bf16 %v672_v40, %v672_v40 }
 0x733   :  { %v669_v43 = vpop.f32.mrf.mxu0 }
 0x734   :  { %932 = vmatmul.mubr.msk.bf16.vlgmr.msra.gmra.mxu0 %vm73_vm1, %v674_v42 }
 0x735   :  { %v922_v44 = vpop.f32.mrf.mxu0 }
 0x7f4   :  { %v748_v45 = vpop.f32.mrf.mxu0 }
 0x7f5   :  { %v749_v46 = vadd.f32 %v815_v1, %v748_v45 }
 0x7f6   :  { %v933_v47 = vpop.f32.mrf.mxu0 }
 0x7f7   :  { %754 = vst [vmem:[#allocation2] sm:$0x3] %v749_v46 }
 0x7f8   :  { %v751_v48 = vpop.f32.mrf.mxu0 }
 0x7f9   :  { %976 = shalt.err (!%p973_p4)
}
 0x7fa   :  { %764 = dma.vmem_to_hbm [thread:$0]  %s762_s24, 32, %s1233_s9, [#allocation3]   ;;  %v934_v49 = vpop.f32.mrf.mxu0 }
 0x7fb   :  { %985 = dma.done.wait [#allocation3], 32  }
 0x7fc   :  { %986 = vsyncadd [#allocation3], 4294967264 }
 0x7fd   :  { %768 = vsyncpa [#allocation3], 1 }

</bundles_post_ra>
